<compile_context>
chip_gen: v7x
topology: tpu7x:2x2x1
jax: 0.10.0
libtpu: 0.0.40
codegen_flags: <defaults>
</compile_context>

<pallas_src>
import jax
import jax.numpy as jnp
from jax.experimental import pallas as pl
from jax.experimental.pallas import tpu as pltpu


def _round_up(x, m):
    return (x + m - 1) // m * m


def vnet_kernel(x_ref, w1_ref, b1_ref, w2_ref, b2_ref, w3_ref, b3_ref, o_ref):
    """One batch tile of the fused 3-layer MLP.

    Weights are VMEM-resident (constant index_maps); only the state tile streams in
    and a lane-dense (1, TILE_B) output row streams out.
    """
    # Cast the state tile to the MXU dtype in-kernel (keeps the HBM stream unpadded/uncast).
    x = x_ref[...].astype(w1_ref.dtype)

    # Layer 1: (TB, S) @ (S, Hp) -> f32 accumulation; bias + ReLU in f32 (v5e-safe VPU path).
    h1 = jnp.dot(x, w1_ref[...], preferred_element_type=jnp.float32) + b1_ref[...]
    h1 = jnp.maximum(h1, 0.0)

    # Layer 2: (TB, Hp) @ (Hp, Hp) -> f32 accumulation; bias + ReLU in f32.
    h2 = jnp.dot(h1.astype(w2_ref.dtype), w2_ref[...],
                 preferred_element_type=jnp.float32) + b2_ref[...]
    h2 = jnp.maximum(h2, 0.0)

    # Layer 3 (N=1 head): VPU multiply + lane reduction against the (1, Hp) weight row,
    # then repack to a lane-dense (1, TILE_B) row (relayout rides the XLU, which has slack).
    w3_row = w3_ref[...].astype(jnp.float32)            # (1, Hp)
    v = jnp.sum(h2 * w3_row, axis=-1) + b3_ref[0]       # (TILE_B,)
    o_ref[...] = v.reshape(1, -1).astype(o_ref.dtype)   # (1, TILE_B), unmasked store


def prepare_params(params, compute_dtype=jnp.bfloat16):
    """One-time weight padding/cast, hoisted out of the forward path.

    The hidden dim is zero-padded to a multiple of 128 (exact for this MLP: padded
    hidden units are ReLU(0)=0 and multiply zero weight rows/entries downstream).
    """
    S, H = params["w1"].shape
    Hp = _round_up(H, 128)
    cd = compute_dtype
    w1 = jnp.zeros((S, Hp), cd).at[:, :H].set(params["w1"].astype(cd))
    w2 = jnp.zeros((Hp, Hp), cd).at[:H, :H].set(params["w2"].astype(cd))
    w3 = jnp.zeros((1, Hp), cd).at[0, :H].set(params["w3"][:, 0].astype(cd))
    b1 = jnp.zeros((1, Hp), jnp.float32).at[0, :H].set(params["b1"].astype(jnp.float32))
    b2 = jnp.zeros((1, Hp), jnp.float32).at[0, :H].set(params["b2"].astype(jnp.float32))
    b3 = params["b3"].reshape(1).astype(jnp.float32)
    return {"w1": w1, "b1": b1, "w2": w2, "b2": b2, "w3": w3, "b3": b3,
            "state_dim": S, "hidden_pad": Hp}


def _choose_tile_b(B, tile_b):
    """Largest batch tile (multiple of 8) <= tile_b that still gives >=2 grid steps
    when the batch is big enough to split (feeds both TensorCores on v7x)."""
    b8 = _round_up(max(B, 1), 8)
    tb = min(_round_up(tile_b, 8), b8)
    if b8 // tb < 2 and b8 >= 16:
        tb = _round_up((b8 + 1) // 2, 8)
    return tb


def vnetwork_forward(state, prepped, *, tile_b=1024):
    """Fused V-network forward.

    state:   (B, state_dim) array (any float dtype; cast to the MXU dtype in-kernel)
    prepped: output of prepare_params()
    tile_b:  batch tile size (sweep 512/1024/2048 on real workloads)
    """
    B, S = state.shape
    assert S == prepped["state_dim"], (S, prepped["state_dim"])
    Hp = prepped["hidden_pad"]
    w1, b1, w2, b2, w3, b3 = (prepped[k] for k in ("w1", "b1", "w2", "b2", "w3", "b3"))
    cd = w1.dtype

    TILE_B = _choose_tile_b(B, tile_b)
    num_tiles = (B + TILE_B - 1) // TILE_B
    B_pad = num_tiles * TILE_B
    # Only the batch is padded (cheap: S stays unpadded); padded rows are sliced off.
    x = state if B_pad == B else jnp.pad(state, ((0, B_pad - B), (0, 0)))

    x_isz = jnp.dtype(x.dtype).itemsize
    w_isz = jnp.dtype(cd).itemsize
    flops = 2 * B_pad * (S * Hp + Hp * Hp + Hp)
    bytes_accessed = (
        B_pad * S * x_isz                          # state stream (unpadded S)
        + (S * Hp + Hp * Hp + Hp) * w_isz          # weights (resident, fetched once)
        + (2 * Hp + 1) * 4                         # biases (f32)
        + B_pad * 4                                # lane-dense output
    )
    vmem_need = (
        2 * TILE_B * S * x_isz                     # state tile, double-buffered
        + 2 * TILE_B * 4                           # output row, double-buffered
        + 2 * ((S + Hp + 1) * Hp * w_isz + 2 * Hp * 4)   # resident weights/biases
        + 2 * TILE_B * Hp * 4                      # h1/h2 f32 temporaries
    )
    vmem_limit = min(max(2 * vmem_need, 16 << 20), 64 << 20)

    out = pl.pallas_call(
        vnet_kernel,
        out_shape=jax.ShapeDtypeStruct((num_tiles, TILE_B), state.dtype),
        grid=(num_tiles,),
        in_specs=[
            pl.BlockSpec((TILE_B, S), lambda i: (i, 0)),        # state tile (unpadded S)
            pl.BlockSpec((S, Hp), lambda i: (0, 0)),            # w1 (resident)
            pl.BlockSpec((1, Hp), lambda i: (0, 0)),            # b1
            pl.BlockSpec((Hp, Hp), lambda i: (0, 0)),           # w2 (resident)
            pl.BlockSpec((1, Hp), lambda i: (0, 0)),            # b2
            pl.BlockSpec((1, Hp), lambda i: (0, 0)),            # w3 as a lane row
            pl.BlockSpec(memory_space=pltpu.MemorySpace.SMEM),  # b3 scalar in SMEM
        ],
        out_specs=pl.BlockSpec((1, TILE_B), lambda i: (i, 0)),  # lane-dense output row
        compiler_params=pltpu.CompilerParams(
            dimension_semantics=("parallel",),                  # 2 TCs on v7x
            vmem_limit_bytes=int(vmem_limit),
        ),
        cost_estimate=pl.CostEstimate(
            flops=int(flops), transcendentals=0, bytes_accessed=int(bytes_accessed)),
    )(x, w1, b1, w2, b2, w3, b3)

    return out.reshape(-1)[:B].reshape(B, 1)


def init_params(key, state_dim, hidden_dim):
    """Deterministic init mimicking PyTorch nn.Linear default
    (uniform(-1/sqrt(fan_in), 1/sqrt(fan_in))). Weights stored as (in, out)."""
    ks = jax.random.split(key, 6)

    def lin(kw, kb, fan_in, fan_out):
        bound = 1.0 / jnp.sqrt(fan_in)
        w = jax.random.uniform(kw, (fan_in, fan_out), jnp.float32, -bound, bound)
        b = jax.random.uniform(kb, (fan_out,), jnp.float32, -bound, bound)
        return w, b

    w1, b1 = lin(ks[0], ks[1], state_dim, hidden_dim)
    w2, b2 = lin(ks[2], ks[3], hidden_dim, hidden_dim)
    w3, b3 = lin(ks[4], ks[5], hidden_dim, 1)
    return {"w1": w1, "b1": b1, "w2": w2, "b2": b2, "w3": w3, "b3": b3}


def vnetwork_ref(state, params):
    """Pure-JAX f32 reference (matches the PyTorch module)."""
    h1 = jnp.maximum(state @ params["w1"] + params["b1"], 0.0)
    h2 = jnp.maximum(h1 @ params["w2"] + params["b2"], 0.0)
    return h2 @ params["w3"] + params["b3"]


if __name__ == "__main__":
    key = jax.random.PRNGKey(0)
    k_param, k_state = jax.random.split(key)

    B = 8            # small demo batch of states
    STATE_DIM = 16   # state_dim
    HIDDEN = 256     # module default hidden_dim (already 128-aligned)

    params = init_params(k_param, STATE_DIM, HIDDEN)
    state = jax.random.normal(k_state, (B, STATE_DIM), jnp.float32)

    ref = vnetwork_ref(state, params)

    # Full-precision path: check against the f32 reference.
    pp_f32 = prepare_params(params, compute_dtype=jnp.float32)
    out_f32 = jax.block_until_ready(vnetwork_forward(state, pp_f32))
    assert out_f32.shape == (B, 1), out_f32.shape
    assert jnp.allclose(out_f32, ref, atol=1e-4, rtol=1e-4), (
        f"f32 max abs err {jnp.max(jnp.abs(out_f32 - ref))}")

    # bf16-MXU path (perf config on all generations): f32 accumulation, looser tolerance.
    pp_bf16 = prepare_params(params, compute_dtype=jnp.bfloat16)
    out_bf16 = jax.block_until_ready(vnetwork_forward(state, pp_bf16))
    assert out_bf16.shape == (B, 1), out_bf16.shape
    assert jnp.allclose(out_bf16, ref, atol=5e-2, rtol=5e-2), (
        f"bf16 max abs err {jnp.max(jnp.abs(out_bf16 - ref))}")

    print("KERNEL_OK")
</pallas_src>

<mosaic_0001>
module attributes {stable_mosaic.version = 11 : i64} {
  func.func @vnet_kernel(%arg0: i32, %arg1: memref<8x16xf32, #tpu.memory_space<vmem>>, %arg2: memref<16x256xf32, #tpu.memory_space<vmem>>, %arg3: memref<1x256xf32, #tpu.memory_space<vmem>>, %arg4: memref<256x256xf32, #tpu.memory_space<vmem>>, %arg5: memref<1x256xf32, #tpu.memory_space<vmem>>, %arg6: memref<1x256xf32, #tpu.memory_space<vmem>>, %arg7: memref<1xf32, #tpu.memory_space<smem>>, %arg8: memref<1x8xf32, #tpu.memory_space<vmem>>) attributes {dimension_semantics = [#tpu.dimension_semantics<parallel>], iteration_bounds = array<i64: 1>, scalar_prefetch = 0 : i64, scratch_operands = 0 : i64, tpu.core_type = #tpu.core_type<tc>, window_params = [{transform_indices = @transform_0, window_bounds = array<i64: 8, 16>}, {pipeline_mode = #tpu.pipeline_mode<synchronous>, transform_indices = @transform_1, window_bounds = array<i64: 16, 256>}, {pipeline_mode = #tpu.pipeline_mode<synchronous>, transform_indices = @transform_2, window_bounds = array<i64: 1, 256>}, {pipeline_mode = #tpu.pipeline_mode<synchronous>, transform_indices = @transform_3, window_bounds = array<i64: 256, 256>}, {pipeline_mode = #tpu.pipeline_mode<synchronous>, transform_indices = @transform_4, window_bounds = array<i64: 1, 256>}, {pipeline_mode = #tpu.pipeline_mode<synchronous>, transform_indices = @transform_5, window_bounds = array<i64: 1, 256>}, {transform_indices = @transform_6, window_bounds = array<i64: 1>}, {transform_indices = @transform_7, window_bounds = array<i64: 1, 8>}]} {
    %c0 = arith.constant 0 : index
    %c0_0 = arith.constant 0 : index
    %0 = vector.load %arg1[%c0, %c0_0] : memref<8x16xf32, #tpu.memory_space<vmem>>, vector<8x16xf32>
    %c0_1 = arith.constant 0 : index
    %c0_2 = arith.constant 0 : index
    %1 = vector.load %arg2[%c0_1, %c0_2] : memref<16x256xf32, #tpu.memory_space<vmem>>, vector<16x256xf32>
    %cst = arith.constant dense<0.000000e+00> : vector<8x256xf32>
    %2 = tpu.matmul %0, %1, %cst {dimension_numbers = #tpu.dot_dimension_numbers<[1], [0], [0], [1], [0, 0, 1, 1], [], []>} : vector<8x16xf32>, vector<16x256xf32>, vector<8x256xf32> -> vector<8x256xf32>
    %c0_3 = arith.constant 0 : index
    %c0_4 = arith.constant 0 : index
    %3 = vector.load %arg3[%c0_3, %c0_4] : memref<1x256xf32, #tpu.memory_space<vmem>>, vector<1x256xf32>
    %4 = vector.broadcast %3 : vector<1x256xf32> to vector<8x256xf32>
    %5 = arith.addf %2, %4 : vector<8x256xf32>
    %cst_5 = arith.constant 0.000000e+00 : f32
    %6 = vector.broadcast %cst_5 : f32 to vector<8x256xf32>
    %7 = arith.maximumf %5, %6 : vector<8x256xf32>
    %c0_6 = arith.constant 0 : index
    %c0_7 = arith.constant 0 : index
    %8 = vector.load %arg4[%c0_6, %c0_7] : memref<256x256xf32, #tpu.memory_space<vmem>>, vector<256x256xf32>
    %cst_8 = arith.constant dense<0.000000e+00> : vector<8x256xf32>
    %9 = tpu.matmul %7, %8, %cst_8 {dimension_numbers = #tpu.dot_dimension_numbers<[1], [0], [0], [1], [0, 0, 1, 1], [], []>} : vector<8x256xf32>, vector<256x256xf32>, vector<8x256xf32> -> vector<8x256xf32>
    %c0_9 = arith.constant 0 : index
    %c0_10 = arith.constant 0 : index
    %10 = vector.load %arg5[%c0_9, %c0_10] : memref<1x256xf32, #tpu.memory_space<vmem>>, vector<1x256xf32>
    %11 = vector.broadcast %10 : vector<1x256xf32> to vector<8x256xf32>
    %12 = arith.addf %9, %11 : vector<8x256xf32>
    %cst_11 = arith.constant 0.000000e+00 : f32
    %13 = vector.broadcast %cst_11 : f32 to vector<8x256xf32>
    %14 = arith.maximumf %12, %13 : vector<8x256xf32>
    %c0_12 = arith.constant 0 : index
    %c0_13 = arith.constant 0 : index
    %15 = vector.load %arg6[%c0_12, %c0_13] : memref<1x256xf32, #tpu.memory_space<vmem>>, vector<1x256xf32>
    %16 = vector.broadcast %15 : vector<1x256xf32> to vector<8x256xf32>
    %17 = arith.mulf %14, %16 : vector<8x256xf32>
    %cst_14 = arith.constant dense<0.000000e+00> : vector<8xf32>
    %18 = vector.multi_reduction <add>, %17, %cst_14 [1] : vector<8x256xf32> to vector<8xf32>
    %c0_15 = arith.constant 0 : index
    %19 = memref.load %arg7[%c0_15] : memref<1xf32, #tpu.memory_space<smem>>
    %20 = vector.broadcast %19 : f32 to vector<8xf32>
    %21 = arith.addf %18, %20 : vector<8xf32>
    %22 = vector.shape_cast %21 : vector<8xf32> to vector<1x8xf32>
    %c0_16 = arith.constant 0 : index
    %c0_17 = arith.constant 0 : index
    %23 = vector.load %arg8[%c0_16, %c0_17] : memref<1x8xf32, #tpu.memory_space<vmem>>, vector<1x8xf32>
    tpu.vector_store %arg8[%c0_16, %c0_17], %22 {strides = array<i32>} : memref<1x8xf32, #tpu.memory_space<vmem>>, vector<1x8xf32>,
    return
  }
  func.func @transform_0(%arg0: i32) -> (i32, i32) {
    %c0_i32 = arith.constant 0 : i32
    %c0_i32_0 = arith.constant 0 : i32
    return %arg0, %c0_i32 : i32, i32
  }
  func.func @transform_1(%arg0: i32) -> (i32, i32) {
    %c0_i32 = arith.constant 0 : i32
    %c0_i32_0 = arith.constant 0 : i32
    %c0_i32_1 = arith.constant 0 : i32
    return %c0_i32, %c0_i32_0 : i32, i32
  }
  func.func @transform_2(%arg0: i32) -> (i32, i32) {
    %c0_i32 = arith.constant 0 : i32
    %c0_i32_0 = arith.constant 0 : i32
    %c0_i32_1 = arith.constant 0 : i32
    return %c0_i32, %c0_i32_0 : i32, i32
  }
  func.func @transform_3(%arg0: i32) -> (i32, i32) {
    %c0_i32 = arith.constant 0 : i32
    %c0_i32_0 = arith.constant 0 : i32
    %c0_i32_1 = arith.constant 0 : i32
    return %c0_i32, %c0_i32_0 : i32, i32
  }
  func.func @transform_4(%arg0: i32) -> (i32, i32) {
    %c0_i32 = arith.constant 0 : i32
    %c0_i32_0 = arith.constant 0 : i32
    %c0_i32_1 = arith.constant 0 : i32
    return %c0_i32, %c0_i32_0 : i32, i32
  }
  func.func @transform_5(%arg0: i32) -> (i32, i32) {
    %c0_i32 = arith.constant 0 : i32
    %c0_i32_0 = arith.constant 0 : i32
    %c0_i32_1 = arith.constant 0 : i32
    return %c0_i32, %c0_i32_0 : i32, i32
  }
  func.func @transform_6(%arg0: i32) -> i32 {
    %c0_i32 = arith.constant 0 : i32
    %c0_i32_0 = arith.constant 0 : i32
    return %c0_i32 : i32
  }
  func.func @transform_7(%arg0: i32) -> (i32, i32) {
    %c0_i32 = arith.constant 0 : i32
    %c0_i32_0 = arith.constant 0 : i32
    return %arg0, %c0_i32 : i32, i32
  }
}

</mosaic_0001>

<bundles_post_ra>
// kernel: tpu_custom_call.1
= control target key start
LH: loop header
LB: loop body
LE: loop exit
PB: predicated region body
PF: predicated region fallthrough
CT: control target
= control target key end

     0   :  { %13 = vsyncpa [#allocation4], 0  ;;  %s639_s0 = inlined_call_operand.hbm [shape: f32[8,16], index: 0, kind: input, shape index: {}]   ;;  %s640_s1 = inlined_call_operand.hbm [shape: f32[16,256], index: 1, kind: input, shape index: {}]   ;;  %s641_s2 = inlined_call_operand.vmem [shape: f32[1,256], index: 2, kind: input, shape index: {}]   ;;  %s642_s3 = inlined_call_operand.hbm [shape: f32[256,256], index: 3, kind: input, shape index: {}]   ;;  %s643_s4 = inlined_call_operand.vmem [shape: f32[1,256], index: 4, kind: input, shape index: {}]   ;;  %s644_s5 = inlined_call_operand.vmem [shape: f32[1,256], index: 5, kind: input, shape index: {}]   ;;  %s645_s6 = inlined_call_operand.<no memory space> [shape: f32[1], index: 6, kind: input, shape index: {}]   ;;  %s646_s7 = inlined_call_operand.hbm [shape: f32[1,8], index: 7, kind: output, shape index: {}]  }
   0x1   :  { %14 = vsyncpa [#allocation7], 0 }
   0x2   :  { %15 = vsyncpa [#allocation5], 0  ;;  %s526_s24 = smov [#allocation6]   ;;  %s432_s28 = scalar_lea.hbm %s640_s1, 512 }
   0x3   :  { %s31_s25 = sshll.u32 %s526_s24, 4  ;;  %p433_p0 = scmp.ne.s32.totalorder %s640_s1, %s432_s28  ;;  %s32_s25 = int_to_ptr.vmem [resolvable:$true] %s31_s25 }
   0x4   :  { %p436_p1 = scmp.lt.u32.totalorder %s432_s28, %s640_s1 }
   0x6   :  { %p438_p2 = pnand %p436_p1, %p433_p0 }
   0x8   :  { %441 = shalt.err (!%p438_p2)
}
   0x9   :  { %s442_s10 = scalar_lea.vmem %s32_s25, 512  ;;  %p447_p4 = scmp.lt.s32.totalorder %s32_s25, %s32_s25 }
   0xa   :  { %p443_p3 = scmp.ne.s32.totalorder %s32_s25, %s442_s10  ;;  %p448_p5 = scmp.lt.s32.totalorder %s442_s10, %s442_s10 }
   0xc   :  { %p449_p6 = por %p448_p5, %p447_p4 }
   0xe   :  { %p450_p7 = pnand %p449_p6, %p443_p3 }
  0x10   :  { %453 = shalt.err (!%p450_p7)
}
  0x11   :  { %s527_s11 = smov 256   ;;  %s528_s12 = smov 16  }
  0x12   :  { %37 = dma.hbm_to_vmem [thread:$0]  %s640_s1, 512, %s32_s25, [#allocation7], %s527_s11, %s527_s11, %s528_s12  }
  0x13   :  { %s529_s15 = smov [#allocation3]   ;;  %s530_s17 = smov [#allocation8]  }
  0x14   :  { %s22_s16 = sshll.u32 %s529_s15, 4  ;;  %s45_s18 = sshll.u32 %s530_s17, 4  ;;  %s23_s16 = int_to_ptr.vmem [resolvable:$true] %s22_s16  ;;  %s46_s18 = int_to_ptr.vmem [resolvable:$true] %s45_s18 }
  0x15   :  { %s454_s21 = scalar_lea.hbm %s639_s0, 128 }
  0x16   :  { %p455_p8 = scmp.ne.s32.totalorder %s639_s0, %s454_s21  ;;  %p458_p9 = scmp.lt.u32.totalorder %s454_s21, %s639_s0 }
  0x18   :  { %p460_p10 = pnand %p458_p9, %p455_p8 }
  0x1a   :  { %463 = shalt.err (!%p460_p10)
}
  0x1b   :  { %s464_s1 = scalar_lea.vmem %s23_s16, 128  ;;  %p469_p12 = scmp.lt.s32.totalorder %s23_s16, %s23_s16 }
  0x1c   :  { %p465_p11 = scmp.ne.s32.totalorder %s23_s16, %s464_s1  ;;  %p470_p13 = scmp.lt.s32.totalorder %s464_s1, %s464_s1 }
  0x1e   :  { %p471_p0 = por %p470_p13, %p469_p12 }
  0x20   :  { %p472_p1 = pnand %p471_p0, %p465_p11 }
  0x22   :  { %475 = shalt.err (!%p472_p1)
}
  0x23   :  { %25 = dma.hbm_to_vmem [thread:$0]  %s639_s0, 128, %s23_s16, [#allocation4]  }
  0x24   :  { %s476_s30 = scalar_lea.hbm %s642_s3, 8192 }
  0x25   :  { %p477_p2 = scmp.ne.s32.totalorder %s642_s3, %s476_s30  ;;  %p480_p3 = scmp.lt.u32.totalorder %s476_s30, %s642_s3 }
  0x27   :  { %p482_p4 = pnand %p480_p3, %p477_p2 }
  0x29   :  { %485 = shalt.err (!%p482_p4)
}
  0x2a   :  { %s486_s14 = scalar_lea.vmem %s46_s18, 8192  ;;  %p491_p6 = scmp.lt.s32.totalorder %s46_s18, %s46_s18 }
  0x2b   :  { %p487_p5 = scmp.ne.s32.totalorder %s46_s18, %s486_s14  ;;  %p492_p7 = scmp.lt.s32.totalorder %s486_s14, %s486_s14 }
  0x2d   :  { %p493_p8 = por %p492_p7, %p491_p6 }
  0x2f   :  { %p494_p9 = pnand %p493_p8, %p487_p5 }
  0x31   :  { %497 = shalt.err (!%p494_p9)
}
  0x32   :  { %51 = dma.hbm_to_vmem [thread:$0]  %s642_s3, 8192, %s46_s18, [#allocation7], %s527_s11, %s527_s11, %s528_s12  }
  0x33   :  { %520 = dma.done.wait [#allocation4], 128  }
  0x34   :  { %521 = vsyncadd [#allocation4], 4294967168 }
  0x35   :  { %522 = dma.done.wait [#allocation7], 8704  }
  0x36   :  { %523 = vsyncadd [#allocation7], 4294958592  ;;  %v531_v0 = vmov 0.0   ;;  %v69_v1 = vld [vmem:[#allocation6 + $0x8] sm:$0xff]  ;;  %v71_v2 = vld [vmem:[#allocation6 + $0x18] sm:$0xff]  ;;  %vm84_vm0 = vcmask 130048  }
  0x37   :  { %152 = vmatprep.mubr.f32.mxu0 %v531_v0  ;;  %v68_v3 = vld [vmem:[#allocation6] sm:$0xff]  ;;  %v357_v4 = vpack.c.bf16 %v71_v2, %v69_v1  ;;  %v70_v5 = vld [vmem:[#allocation6 + $0x10] sm:$0xff]  ;;  %v162_v6 = vld [vmem:[#allocation8 + $0x8] sm:$0xff]  ;;  %vm338_vm1 = vcmask 57344  }
  0x38   :  { %v359_v7 = vpack.c.bf16 %v70_v5, %v68_v3  ;;  %v67_v8 = vld [vmem:[#allocation3] sm:$0xff]  ;;  %v161_v10 = vld [vmem:[#allocation8] sm:$0xff]  ;;  %v163_v11 = vld [vmem:[#allocation8 + $0x10] sm:$0xff] }
  0x39   :  { %v164_v9 = vld [vmem:[#allocation8 + $0x18] sm:$0xff]  ;;  %358 = vmatprep.subr.bf16.mxu0 %v357_v4  ;;  %v363_v13 = vpack.c.bf16 %v163_v11, %v161_v10  ;;  %v166_v14 = vld [vmem:[#allocation8 + $0x28] sm:$0xff]  ;;  %v165_v16 = vld [vmem:[#allocation8 + $0x20] sm:$0xff] }
  0x3a   :  { %v361_v12 = vpack.c.bf16 %v164_v9, %v162_v6  ;;  %v168_v15 = vld [vmem:[#allocation8 + $0x38] sm:$0xff]  ;;  %360 = vmatpush1.bf16.msra.mxu0 %v359_v7  ;;  %v167_v18 = vld [vmem:[#allocation8 + $0x30] sm:$0xff]  ;;  %v170_v19 = vld [vmem:[#allocation8 + $0x48] sm:$0xff] }
  0x3b   :  { %v365_v17 = vpack.c.bf16 %v168_v15, %v166_v14  ;;  %v172_v20 = vld [vmem:[#allocation8 + $0x58] sm:$0xff]  ;;  %v367_v21 = vpack.c.bf16 %v167_v18, %v165_v16  ;;  %v169_v23 = vld [vmem:[#allocation8 + $0x40] sm:$0xff]  ;;  %v171_v24 = vld [vmem:[#allocation8 + $0x50] sm:$0xff] }
  0x3c   :  { %362 = vmatprep.subr.bf16.mxu1 %v361_v12  ;;  %v369_v22 = vpack.c.bf16 %v172_v20, %v170_v19  ;;  %v174_v25 = vld [vmem:[#allocation8 + $0x68] sm:$0xff]  ;;  %v176_v26 = vld [vmem:[#allocation8 + $0x78] sm:$0xff]  ;;  %v371_v27 = vpack.c.bf16 %v171_v24, %v169_v23  ;;  %v173_v29 = vld [vmem:[#allocation8 + $0x60] sm:$0xff] }
  0x3d   :  { %364 = vmatpush1.bf16.msra.mxu1 %v363_v13  ;;  %356 = vmatmul.mubr.msk.f32.vlgmr.msra.gmra.mrb[0].mxu0 %vm84_vm0, %v67_v8  ;;  %v373_v28 = vpack.c.bf16 %v176_v26, %v174_v25  ;;  %v175_v30 = vld [vmem:[#allocation8 + $0x70] sm:$0xff]  ;;  %v178_v31 = vld [vmem:[#allocation8 + $0x88] sm:$0xff]  ;;  %v180_v32 = vld [vmem:[#allocation8 + $0x98] sm:$0xff] }
  0x3e   :  { %366 = vmatprep.subr.bf16.mxu1 %v365_v17  ;;  %v375_v33 = vpack.c.bf16 %v175_v30, %v173_v29  ;;  %v377_v34 = vpack.c.bf16 %v180_v32, %v178_v31  ;;  %v177_v35 = vld [vmem:[#allocation8 + $0x80] sm:$0xff]  ;;  %v179_v36 = vld [vmem:[#allocation8 + $0x90] sm:$0xff]  ;;  %v182_v37 = vld [vmem:[#allocation8 + $0xa8] sm:$0xff] }
  0x3f   :  { %v184_v38 = vld [vmem:[#allocation8 + $0xb8] sm:$0xff]  ;;  %v379_v39 = vpack.c.bf16 %v179_v36, %v177_v35  ;;  %v181_v41 = vld [vmem:[#allocation8 + $0xa0] sm:$0xff]  ;;  %v183_v42 = vld [vmem:[#allocation8 + $0xb0] sm:$0xff] }
  0x40   :  { %v381_v40 = vpack.c.bf16 %v184_v38, %v182_v37  ;;  %v186_v43 = vld [vmem:[#allocation8 + $0xc8] sm:$0xff]  ;;  %v188_v44 = vld [vmem:[#allocation8 + $0xd8] sm:$0xff]  ;;  %v383_v45 = vpack.c.bf16 %v183_v42, %v181_v41  ;;  %v185_v47 = vld [vmem:[#allocation8 + $0xc0] sm:$0xff] }
  0x41   :  { %368 = vmatpush1.bf16.msra.mxu1 %v367_v21  ;;  %v385_v46 = vpack.c.bf16 %v188_v44, %v186_v43  ;;  %v187_v48 = vld [vmem:[#allocation8 + $0xd0] sm:$0xff]  ;;  %v190_v49 = vld [vmem:[#allocation8 + $0xe8] sm:$0xff]  ;;  %v192_v50 = vld [vmem:[#allocation8 + $0xf8] sm:$0xff] }
  0x42   :  { %370 = vmatprep.subr.bf16.mxu1 %v369_v22  ;;  %v387_v51 = vpack.c.bf16 %v187_v48, %v185_v47  ;;  %v389_v52 = vpack.c.bf16 %v192_v50, %v190_v49  ;;  %v189_v53 = vld [vmem:[#allocation8 + $0xe0] sm:$0xff]  ;;  %v191_v54 = vld [vmem:[#allocation8 + $0xf0] sm:$0xff]  ;;  %v194_v55 = vld [vmem:[#allocation8 + $0x108] sm:$0xff] }
  0x43   :  { %v196_v56 = vld [vmem:[#allocation8 + $0x118] sm:$0xff]  ;;  %v391_v57 = vpack.c.bf16 %v191_v54, %v189_v53  ;;  %v193_v59 = vld [vmem:[#allocation8 + $0x100] sm:$0xff]  ;;  %v195_v60 = vld [vmem:[#allocation8 + $0x110] sm:$0xff] }
  0x44   :  { %v393_v58 = vpack.c.bf16 %v196_v56, %v194_v55  ;;  %v198_v61 = vld [vmem:[#allocation8 + $0x128] sm:$0xff]  ;;  %v200_v62 = vld [vmem:[#allocation8 + $0x138] sm:$0xff]  ;;  %v395_v63 = vpack.c.bf16 %v195_v60, %v193_v59  ;;  %v197_v1 = vld [vmem:[#allocation8 + $0x120] sm:$0xff] }
  0x45   :  { %372 = vmatpush1.bf16.msra.mxu1 %v371_v27  ;;  %v397_v0 = vpack.c.bf16 %v200_v62, %v198_v61  ;;  %v199_v2 = vld [vmem:[#allocation8 + $0x130] sm:$0xff]  ;;  %v202_v3 = vld [vmem:[#allocation8 + $0x148] sm:$0xff]  ;;  %v204_v4 = vld [vmem:[#allocation8 + $0x158] sm:$0xff] }
  0x46   :  { %374 = vmatprep.subr.bf16.mxu1 %v373_v28  ;;  %v399_v5 = vpack.c.bf16 %v199_v2, %v197_v1  ;;  %v401_v6 = vpack.c.bf16 %v204_v4, %v202_v3  ;;  %v201_v7 = vld [vmem:[#allocation8 + $0x140] sm:$0xff]  ;;  %v203_v8 = vld [vmem:[#allocation8 + $0x150] sm:$0xff]  ;;  %v206_v9 = vld [vmem:[#allocation8 + $0x168] sm:$0xff] }
  0x47   :  { %v208_v10 = vld [vmem:[#allocation8 + $0x178] sm:$0xff]  ;;  %v403_v11 = vpack.c.bf16 %v203_v8, %v201_v7  ;;  %v205_v13 = vld [vmem:[#allocation8 + $0x160] sm:$0xff]  ;;  %v207_v14 = vld [vmem:[#allocation8 + $0x170] sm:$0xff] }
  0x48   :  { %v405_v12 = vpack.c.bf16 %v208_v10, %v206_v9  ;;  %v210_v15 = vld [vmem:[#allocation8 + $0x188] sm:$0xff]  ;;  %v212_v16 = vld [vmem:[#allocation8 + $0x198] sm:$0xff]  ;;  %v407_v17 = vpack.c.bf16 %v207_v14, %v205_v13  ;;  %v209_v19 = vld [vmem:[#allocation8 + $0x180] sm:$0xff] }
  0x49   :  { %376 = vmatpush1.bf16.msra.mxu1 %v375_v33  ;;  %v409_v18 = vpack.c.bf16 %v212_v16, %v210_v15  ;;  %v211_v20 = vld [vmem:[#allocation8 + $0x190] sm:$0xff]  ;;  %v214_v21 = vld [vmem:[#allocation8 + $0x1a8] sm:$0xff]  ;;  %v216_v22 = vld [vmem:[#allocation8 + $0x1b8] sm:$0xff] }
  0x4a   :  { %378 = vmatprep.subr.bf16.mxu1 %v377_v34  ;;  %v411_v23 = vpack.c.bf16 %v211_v20, %v209_v19  ;;  %v413_v24 = vpack.c.bf16 %v216_v22, %v214_v21  ;;  %v213_v25 = vld [vmem:[#allocation8 + $0x1a0] sm:$0xff]  ;;  %v215_v26 = vld [vmem:[#allocation8 + $0x1b0] sm:$0xff]  ;;  %v218_v27 = vld [vmem:[#allocation8 + $0x1c8] sm:$0xff] }
  0x4b   :  { %v220_v28 = vld [vmem:[#allocation8 + $0x1d8] sm:$0xff]  ;;  %v415_v29 = vpack.c.bf16 %v215_v26, %v213_v25  ;;  %v217_v31 = vld [vmem:[#allocation8 + $0x1c0] sm:$0xff]  ;;  %v219_v32 = vld [vmem:[#allocation8 + $0x1d0] sm:$0xff] }
  0x4c   :  { %v417_v30 = vpack.c.bf16 %v220_v28, %v218_v27  ;;  %v419_v33 = vpack.c.bf16 %v219_v32, %v217_v31  ;;  %v222_v34 = vld [vmem:[#allocation8 + $0x1e8] sm:$0xff]  ;;  %v224_v35 = vld [vmem:[#allocation8 + $0x1f8] sm:$0xff]  ;;  %v221_v37 = vld [vmem:[#allocation8 + $0x1e0] sm:$0xff] }
  0x4d   :  { %380 = vmatpush1.bf16.msra.mxu1 %v379_v39  ;;  %v421_v36 = vpack.c.bf16 %v224_v35, %v222_v34  ;;  %v223_v38 = vld [vmem:[#allocation8 + $0x1f0] sm:$0xff]  ;;  %v72_v43 = vld [vmem:[%s641_s2] sm:$0x3] }
  0x4e   :  { %382 = vmatprep.subr.bf16.mxu1 %v381_v40  ;;  %v423_v39 = vpack.c.bf16 %v223_v38, %v221_v37  ;;  %v74_v40 = vlaneseq  ;;  %v225_v53 = vld [vmem:[%s643_s4] sm:$0x3] }
  0x4f   :  { %v310_v56 = vld [vmem:[%s644_s5] sm:$0x3]  ;;  %s532_s5 = smov [#allocation9]  }
  0x50   :  { %v75_v41 = vshrl.u32 %v74_v40, 7  ;;  %v332_v4 = vand.u32 127, %v74_v40  ;;  %s346_s19 = sshll.u32 %s532_s5, 4  ;;  %s347_s19 = int_to_ptr.vmem [resolvable:$true] %s346_s19 }
  0x51   :  { %384 = vmatpush1.bf16.msra.mxu1 %v383_v45  ;;  %s498_s20 = scalar_lea.vmem %s347_s19, 16  ;;  %s502_s21 = scalar_lea.vmem %s347_s19, 32 }
  0x52   :  { %386 = vmatprep.subr.bf16.mxu1 %v385_v46  ;;  %v76_v42 = vsub.s32 0, %v75_v41  ;;  %v80_v44 = vsub.s32 1, %v75_v41  ;;  %p499_p10 = scmp.ne.s32.totalorder %s347_s19, %s498_s20  ;;  %p503_p11 = scmp.lt.s32.totalorder %s347_s19, %s347_s19 }
  0x53   :  { %p504_p12 = scmp.lt.s32.totalorder %s502_s21, %s498_s20 }
  0x54   :  { %v77_v45 = vrot.slane %v72_v43, %v76_v42  ;;  %v81_v46 = vrot.slane %v72_v43, %v80_v44  ;;  %v230_v54 = vrot.slane %v225_v53, %v76_v42  ;;  %v234_v55 = vrot.slane %v225_v53, %v80_v44 }
  0x55   :  { %388 = vmatpush1.bf16.msra.mxu1 %v387_v51  ;;  %v315_v60 = vrot.slane %v310_v56, %v76_v42  ;;  %v319_v62 = vrot.slane %v310_v56, %v80_v44  ;;  %p505_p13 = por %p504_p12, %p503_p11 }
  0x56   :  { %390 = vmatprep.subr.bf16.mxu1 %v389_v52 }
  0x57   :  { %p506_p0 = pnand %p505_p13, %p499_p10 }
  0x59   :  { %392 = vmatpush1.bf16.msra.mxu1 %v391_v57 }
  0x5a   :  { %394 = vmatprep.subr.bf16.mxu1 %v393_v58 }
  0x5d   :  { %396 = vmatpush1.bf16.msra.mxu1 %v395_v63 }
  0x5e   :  { %398 = vmatprep.subr.bf16.mxu1 %v397_v0 }
  0x61   :  { %400 = vmatpush1.bf16.msra.mxu1 %v399_v5  ;;  %v328_v5 = vstv %s645_s6 }
  0x62   :  { %402 = vmatprep.subr.bf16.mxu1 %v401_v6  ;;  %v335_v6 = vsub.s32 %v332_v4, %v75_v41 }
  0x65   :  { %404 = vmatpush1.bf16.msra.mxu1 %v403_v11 }
  0x66   :  { %406 = vmatprep.subr.bf16.mxu1 %v405_v12 }
  0x69   :  { %408 = vmatpush1.bf16.msra.mxu1 %v407_v17 }
  0x6a   :  { %410 = vmatprep.subr.bf16.mxu1 %v409_v18 }
  0x6d   :  { %412 = vmatpush1.bf16.msra.mxu1 %v411_v23 }
  0x6e   :  { %414 = vmatprep.subr.bf16.mxu1 %v413_v24 }
  0x71   :  { %416 = vmatpush1.bf16.msra.mxu1 %v415_v29 }
  0x72   :  { %418 = vmatprep.subr.bf16.mxu1 %v417_v30 }
  0x75   :  { %420 = vmatpush1.bf16.msra.mxu1 %v419_v33 }
  0x76   :  { %422 = vmatprep.subr.bf16.mxu1 %v421_v36 }
  0x79   :  { %424 = vmatpush1.bf16.msra.mxu1 %v423_v39 }
 0x110   :  { %v154_v47 = vpop.f32.mrb[0].mxu0 }
 0x111   :  { %v155_v48 = vadd.f32 %v154_v47, %v77_v45  ;;  %v156_v49 = vpop.f32.mrb[1].mxu0 }
 0x112   :  { %v157_v50 = vadd.f32 %v156_v49, %v81_v46 }
 0x113   :  { %v159_v52 = vmax.f32 %v155_v48, 0.0 }
 0x114   :  { %v160_v51 = vmax.f32 %v157_v50, 0.0 }
 0x116   :  { %301 = vmatprep.mubr.f32.mxu1 %v160_v51 }
 0x117   :  { %302 = vmatmul.mubr.f32.vlgmr.msra.gmra.mrb[0].mxu1 %v159_v52 }
 0x1ea   :  { %v303_v57 = vpop.f32.mrb[0].mxu1 }
 0x1eb   :  { %v304_v58 = vadd.f32 %v303_v57, %v230_v54  ;;  %v305_v59 = vpop.f32.mrb[1].mxu1 }
 0x1ec   :  { %v306_v61 = vadd.f32 %v305_v59, %v234_v55 }
 0x1ed   :  { %v308_v63 = vmax.f32 %v304_v58, 0.0 }
 0x1ee   :  { %v309_v0 = vmax.f32 %v306_v61, 0.0 }
 0x1ef   :  { %v322_v1 = vmul.f32 %v315_v60, %v308_v63 }
 0x1f0   :  { %v323_v2 = vmul.f32 %v319_v62, %v309_v0 }
 0x1f2   :  { %v324_v3 = vadd.f32 %v323_v2, %v322_v1 }
 0x1f4   :  { %325 = vadd.xlane.f32.xlu0 %v324_v3 }
 0x281   :  { %v326_v7 = vpop.xlane.xlu0 %325 }
 0x282   :  { %v329_v8 = vadd.f32 %v328_v5, %v326_v7 }
 0x284   :  { %v336_v9 = vrot.slane %v329_v8, %v335_v6 }
 0x286   :  { %339 = vst.msk [vmem:[#allocation9] sm:$0x1] %vm338_vm1, %v336_v9 }
 0x287   :  { %509 = shalt.err (!%p506_p0)
}
 0x288   :  { %s510_s6 = scalar_lea.hbm %s646_s7, 16 }
 0x289   :  { %p511_p1 = scmp.ne.s32.totalorder %s646_s7, %s510_s6  ;;  %p514_p2 = scmp.lt.u32.totalorder %s510_s6, %s646_s7 }
 0x28b   :  { %p516_p3 = pnand %p514_p2, %p511_p1 }
 0x28d   :  { %519 = shalt.err (!%p516_p3)
}
 0x28e   :  { %349 = dma.vmem_to_hbm [thread:$0]  %s347_s19, 16, %s646_s7, [#allocation5]  }
 0x28f   :  { %524 = dma.done.wait [#allocation5], 16  }
 0x290   :  { %525 = vsyncadd [#allocation5], 4294967280 }
 0x291   :  { %353 = vsyncpa [#allocation4], 1 }
 0x292   :  { %354 = vsyncpa [#allocation7], 1 }
 0x293   :  { %355 = vsyncpa [#allocation5], 1 }

</bundles_post_ra>
